<compile_context>
chip_gen: v7x
topology: tpu7x:2x2x1
jax: 0.10.0
libtpu: 0.0.40
codegen_flags: <defaults>
</compile_context>

<pallas_src>
import functools

import jax
import jax.numpy as jnp
from jax.experimental import pallas as pl
from jax.experimental.pallas import tpu as pltpu

_LANE = 128
_MAX_TILE_ROWS = 1024  # (1024, 128) f32 block = 512 KiB; 2 inputs x 2 bufs = 2 MiB


def _round_up(x, m):
    return (x + m - 1) // m * m


def _dice_kernel(pred_ref, gt_ref, out_ref, acc_inter_ref, acc_sum_ref,
                 *, n_rows, tile_rows, mask_tail):
    i = pl.program_id(0)

    @pl.when(i == 0)
    def _init():
        acc_inter_ref[...] = jnp.zeros_like(acc_inter_ref)
        acc_sum_ref[...] = jnp.zeros_like(acc_sum_ref)

    # Native-dtype read from HBM; cast on the VPU (hidden under the DMA).
    p = pred_ref[...].astype(jnp.float32)
    g = gt_ref[...].astype(jnp.float32)

    if mask_tail:
        # The last block runs past the end of the array; out-of-range rows hold
        # unspecified data, so zero them (zeros are neutral for all the sums).
        row = i * tile_rows + jax.lax.broadcasted_iota(
            jnp.int32, (tile_rows, _LANE), 0)
        valid = row < n_rows
        p = jnp.where(valid, p, 0.0)
        g = jnp.where(valid, g, 0.0)

    # Elementwise accumulation into vreg-shaped accumulators (pure VPU work);
    # summing over the leading axis of the (-1, 8, 128) view is just vreg adds.
    acc_inter_ref[...] += (p * g).reshape(-1, 8, _LANE).sum(axis=0)
    acc_sum_ref[...] += (p + g).reshape(-1, 8, _LANE).sum(axis=0)

    @pl.when(i == pl.num_programs(0) - 1)
    def _finalize():
        eps = jnp.float32(1e-05)
        intersection = jnp.sum(acc_inter_ref[...])
        unionset = jnp.sum(acc_sum_ref[...])
        out_ref[0, 0] = (2.0 * intersection + eps) / (unionset + eps)


def my_loss(pred, gt):
    """Pallas TPU implementation of My_Loss.forward (global dice score)."""
    assert pred.shape == gt.shape
    total = pred.size

    pred_flat = pred.reshape(-1)
    gt_flat = gt.reshape(-1)

    # Reshape to a lane-dense (rows, 128) slab.  For typical NCHW inputs
    # total % 128 == 0 and this is a free view; only odd sizes pay a pad copy.
    pad = (-total) % _LANE
    if pad:
        pred_flat = jnp.pad(pred_flat, (0, pad))
        gt_flat = jnp.pad(gt_flat, (0, pad))
    p2 = pred_flat.reshape(-1, _LANE)
    g2 = gt_flat.reshape(-1, _LANE)
    n_rows = p2.shape[0]

    tile_rows = min(_MAX_TILE_ROWS, _round_up(n_rows, 8))
    grid = (pl.cdiv(n_rows, tile_rows),)
    mask_tail = (n_rows % tile_rows) != 0

    kernel = functools.partial(
        _dice_kernel, n_rows=n_rows, tile_rows=tile_rows, mask_tail=mask_tail)

    out = pl.pallas_call(
        kernel,
        out_shape=jax.ShapeDtypeStruct((1, 1), jnp.float32),
        grid_spec=pltpu.PrefetchScalarGridSpec(
            num_scalar_prefetch=0,
            grid=grid,
            in_specs=[
                pl.BlockSpec((tile_rows, _LANE), lambda i: (i, 0)),
                pl.BlockSpec((tile_rows, _LANE), lambda i: (i, 0)),
            ],
            out_specs=pl.BlockSpec(memory_space=pltpu.SMEM),
            scratch_shapes=[
                pltpu.VMEM((8, _LANE), jnp.float32),
                pltpu.VMEM((8, _LANE), jnp.float32),
            ],
        ),
        # TODO(synk): on v7x, a two-stage formulation (per-block partial sums
        # on a "parallel" grid axis + tiny final reduce) would let both
        # TensorCores share the HBM read; single-pass kept here for simplicity.
        compiler_params=pltpu.CompilerParams(
            dimension_semantics=("arbitrary",),  # carried-accumulator reduction
        ),
    )(p2, g2)
    return out[0, 0]


if __name__ == "__main__":
    key = jax.random.PRNGKey(0)
    k1, k2 = jax.random.split(key)
    # shapes consistent with a segmentation dice loss: (N, C, H, W)
    pred = jax.nn.sigmoid(jax.random.normal(k1, (2, 4, 16, 16), dtype=jnp.float32))
    gt = (jax.random.uniform(k2, (2, 4, 16, 16)) > 0.5).astype(jnp.float32)

    dice = jax.block_until_ready(my_loss(pred, gt))

    # reference (plain JAX) check of the exact PyTorch semantics
    eps = 1e-05
    inter = jnp.sum(pred * gt)
    union = jnp.sum(pred) + jnp.sum(gt)
    ref = (2.0 * inter + eps) / (union + eps)
    assert jnp.allclose(dice, ref, rtol=1e-5, atol=1e-6), (dice, ref)

    print("KERNEL_OK")
</pallas_src>

<mosaic_0001>
module attributes {stable_mosaic.version = 11 : i64} {
  func.func @_dice_kernel(%arg0: i32, %arg1: memref<16x128xf32, #tpu.memory_space<vmem>>, %arg2: memref<16x128xf32, #tpu.memory_space<vmem>>, %arg3: memref<1x1xf32, #tpu.memory_space<smem>>, %arg4: memref<8x128xf32, #tpu.memory_space<vmem>>, %arg5: memref<8x128xf32, #tpu.memory_space<vmem>>) attributes {dimension_semantics = [#tpu.dimension_semantics<arbitrary>], iteration_bounds = array<i64: 1>, scalar_prefetch = 0 : i64, scratch_operands = 2 : i64, tpu.core_type = #tpu.core_type<tc>, window_params = [{transform_indices = @transform_0, window_bounds = array<i64: 16, 128>}, {transform_indices = @transform_1, window_bounds = array<i64: 16, 128>}, {transform_indices = @transform_2, window_bounds = array<i64: 1, 1>}]} {
    %c0_i32 = arith.constant 0 : i32
    %0 = arith.cmpi eq, %arg0, %c0_i32 : i32
    %1 = arith.extui %0 : i1 to i32
    %c0_i32_0 = arith.constant 0 : i32
    %2 = arith.cmpi ne, %1, %c0_i32_0 : i32
    scf.if %2 {
      %cst_15 = arith.constant 0.000000e+00 : f32
      %20 = vector.broadcast %cst_15 : f32 to vector<8x128xf32>
      %c0_16 = arith.constant 0 : index
      %c0_17 = arith.constant 0 : index
      %21 = vector.load %arg4[%c0_16, %c0_17] : memref<8x128xf32, #tpu.memory_space<vmem>>, vector<8x128xf32>
      tpu.vector_store %arg4[%c0_16, %c0_17], %20 {strides = array<i32>} : memref<8x128xf32, #tpu.memory_space<vmem>>, vector<8x128xf32>,
      %cst_18 = arith.constant 0.000000e+00 : f32
      %22 = vector.broadcast %cst_18 : f32 to vector<8x128xf32>
      %c0_19 = arith.constant 0 : index
      %c0_20 = arith.constant 0 : index
      %23 = vector.load %arg5[%c0_19, %c0_20] : memref<8x128xf32, #tpu.memory_space<vmem>>, vector<8x128xf32>
      tpu.vector_store %arg5[%c0_19, %c0_20], %22 {strides = array<i32>} : memref<8x128xf32, #tpu.memory_space<vmem>>, vector<8x128xf32>,
    } else {
    }
    %c0 = arith.constant 0 : index
    %c0_1 = arith.constant 0 : index
    %3 = vector.load %arg1[%c0, %c0_1] : memref<16x128xf32, #tpu.memory_space<vmem>>, vector<16x128xf32>
    %c0_2 = arith.constant 0 : index
    %c0_3 = arith.constant 0 : index
    %4 = vector.load %arg2[%c0_2, %c0_3] : memref<16x128xf32, #tpu.memory_space<vmem>>, vector<16x128xf32>
    %c0_4 = arith.constant 0 : index
    %c0_5 = arith.constant 0 : index
    %5 = vector.load %arg4[%c0_4, %c0_5] : memref<8x128xf32, #tpu.memory_space<vmem>>, vector<8x128xf32>
    %6 = arith.mulf %3, %4 : vector<16x128xf32>
    %7 = vector.shape_cast %6 : vector<16x128xf32> to vector<2x8x128xf32>
    %cst = arith.constant dense<0.000000e+00> : vector<8x128xf32>
    %8 = vector.multi_reduction <add>, %7, %cst [0] : vector<2x8x128xf32> to vector<8x128xf32>
    %9 = arith.addf %5, %8 : vector<8x128xf32>
    %c0_6 = arith.constant 0 : index
    %c0_7 = arith.constant 0 : index
    %10 = vector.load %arg4[%c0_6, %c0_7] : memref<8x128xf32, #tpu.memory_space<vmem>>, vector<8x128xf32>
    tpu.vector_store %arg4[%c0_6, %c0_7], %9 {strides = array<i32>} : memref<8x128xf32, #tpu.memory_space<vmem>>, vector<8x128xf32>,
    %c0_8 = arith.constant 0 : index
    %c0_9 = arith.constant 0 : index
    %11 = vector.load %arg5[%c0_8, %c0_9] : memref<8x128xf32, #tpu.memory_space<vmem>>, vector<8x128xf32>
    %12 = arith.addf %3, %4 : vector<16x128xf32>
    %13 = vector.shape_cast %12 : vector<16x128xf32> to vector<2x8x128xf32>
    %cst_10 = arith.constant dense<0.000000e+00> : vector<8x128xf32>
    %14 = vector.multi_reduction <add>, %13, %cst_10 [0] : vector<2x8x128xf32> to vector<8x128xf32>
    %15 = arith.addf %11, %14 : vector<8x128xf32>
    %c0_11 = arith.constant 0 : index
    %c0_12 = arith.constant 0 : index
    %16 = vector.load %arg5[%c0_11, %c0_12] : memref<8x128xf32, #tpu.memory_space<vmem>>, vector<8x128xf32>
    tpu.vector_store %arg5[%c0_11, %c0_12], %15 {strides = array<i32>} : memref<8x128xf32, #tpu.memory_space<vmem>>, vector<8x128xf32>,
    %c0_i32_13 = arith.constant 0 : i32
    %17 = arith.cmpi eq, %arg0, %c0_i32_13 : i32
    %18 = arith.extui %17 : i1 to i32
    %c0_i32_14 = arith.constant 0 : i32
    %19 = arith.cmpi ne, %18, %c0_i32_14 : i32
    scf.if %19 {
      %c0_15 = arith.constant 0 : index
      %c0_16 = arith.constant 0 : index
      %20 = vector.load %arg4[%c0_15, %c0_16] : memref<8x128xf32, #tpu.memory_space<vmem>>, vector<8x128xf32>
      %21 = vector.shape_cast %20 : vector<8x128xf32> to vector<1x8x128xf32>
      %cst_17 = arith.constant dense<0.000000e+00> : vector<1xf32>
      %22 = vector.multi_reduction <add>, %21, %cst_17 [1, 2] : vector<1x8x128xf32> to vector<1xf32>
      %23 = vector.shape_cast %22 : vector<1xf32> to vector<1x1x1xf32>
      %24 = vector.extract %23[0, 0, 0] : f32 from vector<1x1x1xf32>
      %c0_18 = arith.constant 0 : index
      %c0_19 = arith.constant 0 : index
      %25 = vector.load %arg5[%c0_18, %c0_19] : memref<8x128xf32, #tpu.memory_space<vmem>>, vector<8x128xf32>
      %26 = vector.shape_cast %25 : vector<8x128xf32> to vector<1x8x128xf32>
      %cst_20 = arith.constant dense<0.000000e+00> : vector<1xf32>
      %27 = vector.multi_reduction <add>, %26, %cst_20 [1, 2] : vector<1x8x128xf32> to vector<1xf32>
      %28 = vector.shape_cast %27 : vector<1xf32> to vector<1x1x1xf32>
      %29 = vector.extract %28[0, 0, 0] : f32 from vector<1x1x1xf32>
      %cst_21 = arith.constant 2.000000e+00 : f32
      %30 = arith.mulf %cst_21, %24 : f32
      %cst_22 = arith.constant 9.99999974E-6 : f32
      %31 = arith.addf %30, %cst_22 : f32
      %cst_23 = arith.constant 9.99999974E-6 : f32
      %32 = arith.addf %29, %cst_23 : f32
      %33 = arith.divf %31, %32 : f32
      %c0_24 = arith.constant 0 : index
      %c0_25 = arith.constant 0 : index
      %34 = memref.load %arg3[%c0_24, %c0_25] : memref<1x1xf32, #tpu.memory_space<smem>>
      memref.store %33, %arg3[%c0_24, %c0_25] : memref<1x1xf32, #tpu.memory_space<smem>>
    } else {
    }
    return
  }
  func.func @transform_0(%arg0: i32) -> (i32, i32) {
    %c0_i32 = arith.constant 0 : i32
    %c0_i32_0 = arith.constant 0 : i32
    return %arg0, %c0_i32 : i32, i32
  }
  func.func @transform_1(%arg0: i32) -> (i32, i32) {
    %c0_i32 = arith.constant 0 : i32
    %c0_i32_0 = arith.constant 0 : i32
    return %arg0, %c0_i32 : i32, i32
  }
  func.func @transform_2(%arg0: i32) -> (i32, i32) {
    %c0_i32 = arith.constant 0 : i32
    %c0_i32_0 = arith.constant 0 : i32
    %c0_i32_1 = arith.constant 0 : i32
    return %c0_i32, %c0_i32_0 : i32, i32
  }
}

</mosaic_0001>

<bundles_post_ra>
// kernel: tpu_custom_call.1
= control target key start
LH: loop header
LB: loop body
LE: loop exit
PB: predicated region body
PF: predicated region fallthrough
CT: control target
= control target key end

     0   :  { %7 = vsyncpa [#allocation5], 0  ;;  %s238_s0 = inlined_call_operand.hbm [shape: f32[16,128], index: 0, kind: input, shape index: {}]   ;;  %s239_s1 = inlined_call_operand.hbm [shape: f32[16,128], index: 1, kind: input, shape index: {}]   ;;  %s240_s2 = inlined_call_operand.hbm [shape: f32[1,1], index: 2, kind: output, shape index: {}]  }
   0x1   :  { %8 = vsyncpa [#allocation8], 0 }
   0x2   :  { %9 = vsyncpa [#allocation6], 0  ;;  %s182_s9 = smov [#allocation4]   ;;  %s122_s13 = scalar_lea.hbm %s238_s0, 256 }
   0x3   :  { %s15_s10 = sshll.u32 %s182_s9, 4  ;;  %p123_p0 = scmp.ne.s32.totalorder %s238_s0, %s122_s13  ;;  %s16_s10 = int_to_ptr.vmem [resolvable:$true] %s15_s10 }
   0x4   :  { %p126_p1 = scmp.lt.u32.totalorder %s122_s13, %s238_s0 }
   0x6   :  { %p128_p2 = pnand %p126_p1, %p123_p0 }
   0x8   :  { %131 = shalt.err (!%p128_p2)
}
   0x9   :  { %s132_s18 = scalar_lea.vmem %s16_s10, 256  ;;  %p137_p4 = scmp.lt.s32.totalorder %s16_s10, %s16_s10 }
   0xa   :  { %p133_p3 = scmp.ne.s32.totalorder %s16_s10, %s132_s18  ;;  %p138_p5 = scmp.lt.s32.totalorder %s132_s18, %s132_s18 }
   0xc   :  { %p139_p6 = por %p138_p5, %p137_p4 }
   0xe   :  { %p140_p7 = pnand %p139_p6, %p133_p3 }
  0x10   :  { %143 = shalt.err (!%p140_p7)
}
  0x11   :  { %s183_s19 = smov 128   ;;  %s184_s20 = smov 8  }
  0x12   :  { %21 = dma.hbm_to_vmem [thread:$0]  %s238_s0, 256, %s16_s10, [#allocation5], %s183_s19, %s183_s19, %s184_s20  }
  0x13   :  { %s185_s23 = smov [#allocation7]   ;;  %s144_s27 = scalar_lea.hbm %s239_s1, 256 }
  0x14   :  { %s27_s24 = sshll.u32 %s185_s23, 4  ;;  %p145_p8 = scmp.ne.s32.totalorder %s239_s1, %s144_s27  ;;  %s28_s24 = int_to_ptr.vmem [resolvable:$true] %s27_s24 }
  0x15   :  { %p148_p9 = scmp.lt.u32.totalorder %s144_s27, %s239_s1 }
  0x17   :  { %p150_p10 = pnand %p148_p9, %p145_p8 }
  0x19   :  { %153 = shalt.err (!%p150_p10)
}
  0x1a   :  { %s154_s4 = scalar_lea.vmem %s28_s24, 256  ;;  %p159_p12 = scmp.lt.s32.totalorder %s28_s24, %s28_s24 }
  0x1b   :  { %p155_p11 = scmp.ne.s32.totalorder %s28_s24, %s154_s4  ;;  %p160_p13 = scmp.lt.s32.totalorder %s154_s4, %s154_s4 }
  0x1d   :  { %p161_p0 = por %p160_p13, %p159_p12 }
  0x1f   :  { %p162_p1 = pnand %p161_p0, %p155_p11 }
  0x21   :  { %165 = shalt.err (!%p162_p1)
}
  0x22   :  { %33 = dma.hbm_to_vmem [thread:$0]  %s239_s1, 256, %s28_s24, [#allocation8], %s183_s19, %s183_s19, %s184_s20  }
  0x23   :  { %176 = dma.done.wait [#allocation5], 256  }
  0x24   :  { %177 = vsyncadd [#allocation5], 4294967040 }
  0x25   :  { %178 = dma.done.wait [#allocation8], 256  }
  0x26   :  { %179 = vsyncadd [#allocation8], 4294967040  ;;  %v46_v0 = vld [vmem:[#allocation4] sm:$0xff]  ;;  %v47_v1 = vld [vmem:[#allocation4 + $0x8] sm:$0xff]  ;;  %s166_s14 = scalar_lea.hbm %s240_s2, 16 }
  0x27   :  { %v48_v2 = vld [vmem:[#allocation7] sm:$0xff]  ;;  %v49_v3 = vld [vmem:[#allocation7 + $0x8] sm:$0xff]  ;;  %p167_p2 = scmp.ne.s32.totalorder %s240_s2, %s166_s14  ;;  %p170_p3 = scmp.lt.u32.totalorder %s166_s14, %s240_s2 }
  0x28   :  { %v51_v4 = vmul.f32 %v48_v2, %v46_v0  ;;  %v52_v5 = vmul.f32 %v49_v3, %v47_v1  ;;  %v57_v6 = vadd.f32 %v48_v2, %v46_v0  ;;  %v58_v7 = vadd.f32 %v49_v3, %v47_v1 }
  0x29   :  { %p172_p4 = pnand %p170_p3, %p167_p2 }
  0x2a   :  { %v53_v8 = vadd.f32 %v52_v5, %v51_v4  ;;  %v59_v9 = vadd.f32 %v58_v7, %v57_v6 }
  0x2c   :  { %66 = vadd.xlane.f32.xlu0 %v53_v8 }
  0x30   :  { %76 = vadd.xlane.f32.xlu0 %v59_v9 }
  0xb9   :  { %v67_v10 = vpop.xlane.xlu0 %66 }
  0xba   :  { %v68_v11 = vrot.slane %v67_v10, 4 }
  0xbc   :  { %v69_v12 = vadd.f32 %v68_v11, %v67_v10 }
  0xbd   :  { %v77_v13 = vpop.xlane.xlu0 %76 }
  0xbe   :  { %v70_v14 = vrot.slane %v69_v12, 2  ;;  %v78_v15 = vrot.slane %v77_v13, 4 }
  0xc0   :  { %v79_v16 = vadd.f32 %v78_v15, %v77_v13  ;;  %v71_v17 = vadd.f32 %v70_v14, %v69_v12 }
  0xc2   :  { %v80_v18 = vrot.slane %v79_v16, 2  ;;  %v72_v19 = vrot.slane %v71_v17, 1 }
  0xc4   :  { %v81_v20 = vadd.f32 %v80_v18, %v79_v16  ;;  %v73_v21 = vadd.f32 %v72_v19, %v71_v17 }
  0xc6   :  { %109 = vpush %v73_v21  ;;  %v82_v22 = vrot.slane %v81_v20, 1 }
  0xc8   :  { %v83_v23 = vadd.f32 %v82_v22, %v81_v20 }
  0xca   :  { %111 = vpush %v83_v23 }
  0xf7   :  { %s110_s1 = spop %109 }
  0xf8   :  { %s85_s8 = smul.f32 2.0, %s110_s1 }
  0xfa   :  { %s86_s9 = sadd.f32 1e-05, %s85_s8 }
  0xfb   :  { %s112_s6 = spop %111 }
  0xfc   :  { %s87_s7 = sadd.f32 1e-05, %s112_s6 }
  0xfe   :  { %v88_v24 = vstv %s87_s7 }
  0xff   :  { %120 = vrcp.f32 %v88_v24 }
 0x109   :  { %v121_v25 = vpop.eup %120 }
 0x10a   :  { %113 = vpush %v121_v25 }
 0x13b   :  { %s114_s10 = spop %113 }
 0x13c   :  { %s91_s11 = smul.f32 %s114_s10, %s86_s9 }
 0x13e   :  { %93 = sst [smem:[#allocation9]] %s91_s11 }
 0x13f   :  { %175 = shalt.err (!%p172_p4)
}
 0x140   :  { %s186_s19 = smov [#allocation9]  }
 0x141   :  { %101 = dma.smem_to_hbm %s186_s19, 16, %s240_s2, [#allocation6]  }
 0x142   :  { %180 = dma.done.wait [#allocation6], 16  }
 0x143   :  { %181 = vsyncadd [#allocation6], 4294967280 }
 0x144   :  { %105 = sfence }
 0x145   :  { %106 = vsyncpa [#allocation5], 1 }
 0x146   :  { %107 = vsyncpa [#allocation8], 1 }
 0x147   :  { %108 = vsyncpa [#allocation6], 1 }

</bundles_post_ra>
